<compile_context>
chip_gen: v7x
topology: tpu7x:2x2x1
jax: 0.10.0
libtpu: 0.0.40
codegen_flags: <defaults>
</compile_context>

<pallas_src>
import functools

import jax
import jax.numpy as jnp
from jax.experimental import pallas as pl
from jax.experimental.pallas import tpu as pltpu

_BN_EPS = 1e-5


def _round_up(x, m):
    return ((x + m - 1) // m) * m


def _vmem_limit_bytes():
    # ~75% of physical VMEM, capped: v5e/v6e (128 MiB) -> 96 MiB, v7x (64 MiB)
    # -> 48 MiB.  Falls back to the portable 32 MiB scoped value.
    try:
        phys = pltpu.get_tpu_info().vmem_capacity_bytes
        return int(min(phys * 3 // 4, 96 * 1024 * 1024))
    except Exception:
        return 32 * 1024 * 1024


def _tiles_for(n):
    """Row tile tm, contraction tile tk (tk a multiple of tm), padded N."""
    # tk multiple of 256 fills the 256-wide MXU (v6e/v7x); tm=256 keeps the
    # "parallel" row axis with >= 2 (even) steps for v7x megacore while
    # amortizing the per-grid-step pipeline overhead.
    tk = min(512, _round_up(n, 256))
    tm = min(256, tk)
    n_pad = _round_up(n, tk)          # tk is a multiple of tm -> both divide n_pad
    return tm, tk, n_pad


# --------------------------------------------------------------------------- #
# Kernel 1: conv1 = (A @ X) @ W1, plus per-row-tile BN partial stats.
# Grid = (row tiles i [parallel], contraction tiles k [arbitrary, last]).
# --------------------------------------------------------------------------- #
def _conv1_kernel(tk, x_resident, a_ref, x_ref, w1_ref, h1_ref, stats_ref,
                  acc_ref):
    k = pl.program_id(1)

    @pl.when(k == 0)
    def _():
        acc_ref[...] = jnp.zeros_like(acc_ref)

    if x_resident:
        # X fully VMEM-resident: grab this k-strip with an aligned dynamic
        # slice, leaving A as the single HBM stream.
        x_strip = x_ref[pl.ds(pl.multiple_of(k * tk, tk), tk), :]
    else:
        x_strip = x_ref[...]
    # (tm, tk) bf16 @ (tk, in) bf16 -> f32 accumulator (tm, in)
    acc_ref[...] += jnp.dot(a_ref[...], x_strip,
                            preferred_element_type=jnp.float32)

    @pl.when(k == pl.num_programs(1) - 1)
    def _():
        ax = acc_ref[...].astype(jnp.bfloat16)               # (tm, in)
        h1 = jnp.dot(ax, w1_ref[...],                        # (tm, hid_pad) f32
                     preferred_element_type=jnp.float32)
        # conv1 bias intentionally omitted: a per-column constant is exactly
        # cancelled by the training-mode BatchNorm mean subtraction below.
        h1_ref[...] = h1.astype(h1_ref.dtype)
        # Per-row-tile partial BN statistics as two direct sublane stores
        # (padded rows of A are zero -> h1 padded rows are zero -> add 0).
        stats_ref[0:1, :] = jnp.sum(h1, axis=0, keepdims=True)
        stats_ref[1:2, :] = jnp.sum(h1 * h1, axis=0, keepdims=True)


# --------------------------------------------------------------------------- #
# Kernel 2 (fused): conv2 aggregate with the conv2 input recomputed on the fly
#   g_k = relu(BN(h1_k)) @ W2 ;  acc += A_ik @ g_k ;  epilogue: +b2, log_softmax
# Grid = (row tiles i [parallel], contraction tiles k [arbitrary, last]).
# --------------------------------------------------------------------------- #
def _conv2_fused_kernel(a_ref, h1_ref, bn_ref, w2_ref, b2_ref, o_ref, acc_ref):
    k = pl.program_id(1)

    @pl.when(k == 0)
    def _():
        acc_ref[...] = jnp.zeros_like(acc_ref)

    scale = bn_ref[0:1, :]                                   # (1, hid_pad) f32
    shift = bn_ref[1:2, :]
    h = h1_ref[...].astype(jnp.float32) * scale + shift      # BN apply
    h = jnp.maximum(h, 0.0)                                   # ReLU
    g = jnp.dot(h.astype(jnp.bfloat16), w2_ref[...],          # (tk, out_pad) f32
                preferred_element_type=jnp.float32)
    acc_ref[...] += jnp.dot(a_ref[...], g.astype(jnp.bfloat16),
                            preferred_element_type=jnp.float32)

    @pl.when(k == pl.num_programs(1) - 1)
    def _():
        # b2 carries -1e30 in padded feature lanes, so they vanish from the
        # softmax with no in-kernel iota/mask work.
        z = acc_ref[...] + b2_ref[...]                       # (tm, out_pad) f32
        m = jnp.max(z, axis=1, keepdims=True)
        s = z - m
        lse = jnp.log(jnp.sum(jnp.exp(s), axis=1, keepdims=True))
        o_ref[...] = s - lse


# --------------------------------------------------------------------------- #
# Wrapper
# --------------------------------------------------------------------------- #
def primary_key_gnn_forward(x, a_norm, params):
    """x: [N, in_feats] f32.  a_norm: GCN-normalized adjacency; either [N, N]
    f32 or already padded + bf16 (e.g. from build_normalized_adjacency with
    pad_to)."""
    n, in_feats = x.shape
    hidden = params["w1"].shape[1]
    out_feats = params["w2"].shape[1]

    hid_pad = _round_up(hidden, 128)
    out_pad = _round_up(out_feats, 128)      # lane-dense output stores
    tm, tk, n_pad = _tiles_for(n)
    num_i = n_pad // tm
    num_k = n_pad // tk

    bf16 = jnp.bfloat16
    vmem_limit = _vmem_limit_bytes()

    # bf16 streams with f32 accumulation; cast before padding so every O(N^2)
    # pass over A moves half the bytes (zeros in padding keep the math exact).
    a_p = a_norm.astype(bf16)
    if a_p.shape[0] < n_pad:
        a_p = jnp.pad(a_p, ((0, n_pad - a_p.shape[0]),
                            (0, n_pad - a_p.shape[1])))
    elif a_p.shape[0] > n_pad:
        a_p = a_p[:n_pad, :n_pad]
    x_p = jnp.pad(x.astype(bf16), ((0, n_pad - n), (0, 0)))
    w1_p = jnp.zeros((in_feats, hid_pad), bf16).at[:, :hidden].set(
        params["w1"].astype(bf16))
    w2_p = jnp.zeros((hid_pad, out_pad), bf16).at[:hidden, :out_feats].set(
        params["w2"].astype(bf16))
    gamma_p = jnp.zeros((hid_pad,), jnp.float32).at[:hidden].set(params["gamma"])
    beta_p = jnp.zeros((hid_pad,), jnp.float32).at[:hidden].set(params["beta"])
    # Padded-lane mask baked into the bias: padded logits become -1e30.
    b2_p = jnp.full((1, out_pad), -1e30, jnp.float32).at[0, :out_feats].set(
        params["b2"].astype(jnp.float32))

    # Keep X resident in VMEM unless its (lane-padded, double-buffered) bf16
    # footprint would eat too much of the budget; then fall back to k-tiles.
    x_resident_bytes = 2 * n_pad * _round_up(in_feats, 128) * 2
    x_resident = x_resident_bytes <= vmem_limit // 4
    if x_resident:
        x_spec = pl.BlockSpec((n_pad, in_feats), lambda i, k: (0, 0))
    else:
        x_spec = pl.BlockSpec((tk, in_feats), lambda i, k: (k, 0))

    # ---------------- Kernel 1: conv1 + BN partial stats ---------------- #
    cost1 = pl.CostEstimate(
        flops=int(2 * n_pad * n_pad * in_feats + 2 * n_pad * in_feats * hid_pad),
        transcendentals=0,
        bytes_accessed=int(2 * n_pad * n_pad + 2 * n_pad * in_feats
                           + 2 * in_feats * hid_pad + 2 * n_pad * hid_pad
                           + 4 * num_i * 8 * hid_pad))
    h1, stats = pl.pallas_call(
        functools.partial(_conv1_kernel, tk, x_resident),
        out_shape=(jax.ShapeDtypeStruct((n_pad, hid_pad), bf16),
                   jax.ShapeDtypeStruct((num_i * 8, hid_pad), jnp.float32)),
        grid=(num_i, num_k),
        in_specs=[
            pl.BlockSpec((tm, tk), lambda i, k: (i, k)),              # A tile
            x_spec,                                                   # X
            pl.BlockSpec((in_feats, hid_pad), lambda i, k: (0, 0)),   # W1 resident
        ],
        out_specs=(pl.BlockSpec((tm, hid_pad), lambda i, k: (i, 0)),
                   pl.BlockSpec((8, hid_pad), lambda i, k: (i, 0))),
        scratch_shapes=[pltpu.VMEM((tm, in_feats), jnp.float32)],
        compiler_params=pltpu.CompilerParams(
            dimension_semantics=("parallel", "arbitrary"),
            vmem_limit_bytes=vmem_limit),
        cost_estimate=cost1,
    )(a_p, x_p, w1_p)

    # ------------- Tiny JAX glue: finish BN stats, fold affine ----------- #
    stats = stats.reshape(num_i, 8, hid_pad)
    total_sum = jnp.sum(stats[:, 0, :], axis=0)
    total_sumsq = jnp.sum(stats[:, 1, :], axis=0)
    mean = total_sum / n                                   # true N, not padded N
    var = jnp.maximum(total_sumsq / n - mean * mean, 0.0)  # biased (training mode)
    scale = gamma_p * jax.lax.rsqrt(var + _BN_EPS)
    shift = beta_p - mean * scale
    bn_vec = (jnp.zeros((8, hid_pad), jnp.float32)
              .at[0].set(scale).at[1].set(shift))          # packed small operand

    # ------- Kernel 2 (fused): BN + ReLU + W2 inside conv2's k-loop ------ #
    cost2 = pl.CostEstimate(
        flops=int(2 * n_pad * n_pad * out_pad
                  + 2 * num_i * n_pad * hid_pad * out_pad
                  + 4 * num_i * n_pad * hid_pad
                  + 3 * n_pad * out_pad),
        transcendentals=int(n_pad * (out_pad + 1)),
        bytes_accessed=int(2 * n_pad * n_pad
                           + 2 * num_i * n_pad * hid_pad
                           + 4 * 8 * hid_pad + 2 * hid_pad * out_pad
                           + 4 * out_pad + 4 * n_pad * out_pad))
    out_padded = pl.pallas_call(
        _conv2_fused_kernel,
        out_shape=jax.ShapeDtypeStruct((n_pad, out_pad), jnp.float32),
        grid=(num_i, num_k),
        in_specs=[
            pl.BlockSpec((tm, tk), lambda i, k: (i, k)),              # A tile
            pl.BlockSpec((tk, hid_pad), lambda i, k: (k, 0)),         # H1 k-tile
            pl.BlockSpec((8, hid_pad), lambda i, k: (0, 0)),          # scale/shift
            pl.BlockSpec((hid_pad, out_pad), lambda i, k: (0, 0)),    # W2 resident
            pl.BlockSpec((1, out_pad), lambda i, k: (0, 0)),          # masked bias
        ],
        out_specs=pl.BlockSpec((tm, out_pad), lambda i, k: (i, 0)),
        scratch_shapes=[pltpu.VMEM((tm, out_pad), jnp.float32)],
        compiler_params=pltpu.CompilerParams(
            dimension_semantics=("parallel", "arbitrary"),
            vmem_limit_bytes=vmem_limit),
        cost_estimate=cost2,
    )(a_p, h1, bn_vec, w2_p, b2_p)

    return out_padded[:n, :out_feats]


# --------------------------------------------------------------------------- #
# Graph preprocessing + params (plain JAX, not the hot path)
# --------------------------------------------------------------------------- #
def build_normalized_adjacency(edge_index, num_nodes, pad_to=None,
                               out_dtype=jnp.float32):
    """GCN normalization: A_norm = D^-1/2 (A + I) D^-1/2, built directly at the
    padded size (no extra O(N^2) pad/copy pass before the kernels).

    Duplicate edges are summed (scatter-add, like PyG) and self-loops are only
    added where missing (add_remaining_self_loops semantics)."""
    n_pad = num_nodes if pad_to is None else max(int(pad_to), num_nodes)
    src, dst = edge_index[0], edge_index[1]
    a = jnp.zeros((n_pad, n_pad), jnp.float32).at[dst, src].add(1.0)
    idx = jnp.arange(num_nodes, dtype=jnp.int32)
    diag = a[idx, idx]
    a = a.at[idx, idx].add(jnp.where(diag == 0.0, 1.0, 0.0))
    deg = jnp.sum(a, axis=1)
    d_inv_sqrt = jnp.where(deg > 0, jax.lax.rsqrt(deg), 0.0)
    return (d_inv_sqrt[:, None] * a * d_inv_sqrt[None, :]).astype(out_dtype)


def init_params(key, in_feats, hidden_size, out_feats):
    k1, k2 = jax.random.split(key)
    w1 = jax.random.normal(k1, (in_feats, hidden_size), jnp.float32) * (
        (2.0 / (in_feats + hidden_size)) ** 0.5)
    w2 = jax.random.normal(k2, (hidden_size, out_feats), jnp.float32) * (
        (2.0 / (hidden_size + out_feats)) ** 0.5)
    # conv1 bias omitted: exactly cancelled by training-mode BatchNorm.
    return {
        "w1": w1,
        "gamma": jnp.ones((hidden_size,), jnp.float32),
        "beta": jnp.zeros((hidden_size,), jnp.float32),
        "w2": w2,
        "b2": jnp.zeros((out_feats,), jnp.float32),
    }


def _reference_forward(x, a_norm, params):
    """Pure-JAX f32 reference of the PyTorch forward (for a sanity check)."""
    h = a_norm @ (x @ params["w1"])
    mean = jnp.mean(h, axis=0, keepdims=True)
    var = jnp.mean((h - mean) ** 2, axis=0, keepdims=True)
    h = (h - mean) * jax.lax.rsqrt(var + _BN_EPS) * params["gamma"] + params["beta"]
    h = jnp.maximum(h, 0.0)
    z = a_norm @ (h @ params["w2"]) + params["b2"]
    return jax.nn.log_softmax(z, axis=1)


if __name__ == "__main__":
    key = jax.random.PRNGKey(0)
    k_x, k_p = jax.random.split(key)

    num_nodes = 256
    in_feats, hidden_size, out_feats = 8, 32, 8

    x = jax.random.normal(k_x, (num_nodes, in_feats), jnp.float32)

    # Undirected ring + a chord at offset 7 (both directions) as edge_index [2, E].
    idx = jnp.arange(num_nodes, dtype=jnp.int32)
    nxt = (idx + 1) % num_nodes
    far = (idx + 7) % num_nodes
    edge_index = jnp.concatenate(
        [jnp.stack([idx, nxt], 0), jnp.stack([nxt, idx], 0),
         jnp.stack([idx, far], 0), jnp.stack([far, idx], 0)], axis=1)

    # Build the normalized adjacency already padded + bf16 so the dominant
    # O(N^2) operand is materialized exactly once before the kernels.
    _, _, n_pad = _tiles_for(num_nodes)
    a_norm_pad = build_normalized_adjacency(edge_index, num_nodes,
                                            pad_to=n_pad,
                                            out_dtype=jnp.bfloat16)
    params = init_params(k_p, in_feats, hidden_size, out_feats)

    out = primary_key_gnn_forward(x, a_norm_pad, params)
    jax.block_until_ready(out)

    assert out.shape == (num_nodes, out_feats)
    # rows of log_softmax must sum (in prob space) to ~1
    assert jnp.allclose(jnp.sum(jnp.exp(out), axis=1), 1.0, atol=1e-3)
    # match the f32 reference forward (bf16 streams -> loose tolerance)
    a_norm_f32 = build_normalized_adjacency(edge_index, num_nodes)
    ref = _reference_forward(x, a_norm_f32, params)
    assert float(jnp.max(jnp.abs(out - ref))) < 0.1
    print("KERNEL_OK")
</pallas_src>

<mosaic_0001>
module attributes {stable_mosaic.version = 11 : i64} {
  func.func @_conv1_kernel(%arg0: i32, %arg1: i32, %arg2: memref<256x256xbf16, #tpu.memory_space<vmem>>, %arg3: memref<256x8xbf16, #tpu.memory_space<vmem>>, %arg4: memref<8x128xbf16, #tpu.memory_space<vmem>>, %arg5: memref<256x128xbf16, #tpu.memory_space<vmem>>, %arg6: memref<8x128xf32, #tpu.memory_space<vmem>>, %arg7: memref<256x8xf32, #tpu.memory_space<vmem>>) attributes {dimension_semantics = [#tpu.dimension_semantics<parallel>, #tpu.dimension_semantics<arbitrary>], iteration_bounds = array<i64: 1, 1>, scalar_prefetch = 0 : i64, scratch_operands = 1 : i64, tpu.core_type = #tpu.core_type<tc>, window_params = [{transform_indices = @transform_0, window_bounds = array<i64: 256, 256>}, {pipeline_mode = #tpu.pipeline_mode<synchronous>, transform_indices = @transform_1, window_bounds = array<i64: 256, 8>}, {pipeline_mode = #tpu.pipeline_mode<synchronous>, transform_indices = @transform_2, window_bounds = array<i64: 8, 128>}, {transform_indices = @transform_3, window_bounds = array<i64: 256, 128>}, {transform_indices = @transform_4, window_bounds = array<i64: 8, 128>}]} {
    %c0_i32 = arith.constant 0 : i32
    %0 = arith.cmpi eq, %arg1, %c0_i32 : i32
    %1 = arith.extui %0 : i1 to i32
    %c0_i32_0 = arith.constant 0 : i32
    %2 = arith.cmpi ne, %1, %c0_i32_0 : i32
    scf.if %2 {
      %cst_9 = arith.constant 0.000000e+00 : f32
      %15 = vector.broadcast %cst_9 : f32 to vector<256x8xf32>
      %c0_10 = arith.constant 0 : index
      %c0_11 = arith.constant 0 : index
      %16 = vector.load %arg7[%c0_10, %c0_11] : memref<256x8xf32, #tpu.memory_space<vmem>>, vector<256x8xf32>
      tpu.vector_store %arg7[%c0_10, %c0_11], %15 {strides = array<i32>} : memref<256x8xf32, #tpu.memory_space<vmem>>, vector<256x8xf32>,
    } else {
    }
    %c256_i32 = arith.constant 256 : i32
    %3 = arith.muli %arg1, %c256_i32 : i32
    %4 = tpu.assume_multiple %3, 256 : i32
    %5 = arith.index_cast %4 : i32 to index
    %c0 = arith.constant 0 : index
    %6 = vector.load %arg3[%5, %c0] : memref<256x8xbf16, #tpu.memory_space<vmem>>, vector<256x8xbf16>
    %c0_1 = arith.constant 0 : index
    %c0_2 = arith.constant 0 : index
    %7 = vector.load %arg7[%c0_1, %c0_2] : memref<256x8xf32, #tpu.memory_space<vmem>>, vector<256x8xf32>
    %c0_3 = arith.constant 0 : index
    %c0_4 = arith.constant 0 : index
    %8 = vector.load %arg2[%c0_3, %c0_4] : memref<256x256xbf16, #tpu.memory_space<vmem>>, vector<256x256xbf16>
    %cst = arith.constant dense<0.000000e+00> : vector<256x8xf32>
    %9 = tpu.matmul %8, %6, %cst {dimension_numbers = #tpu.dot_dimension_numbers<[1], [0], [0], [1], [0, 0, 1, 1], [], []>} : vector<256x256xbf16>, vector<256x8xbf16>, vector<256x8xf32> -> vector<256x8xf32>
    %10 = arith.addf %7, %9 : vector<256x8xf32>
    %c0_5 = arith.constant 0 : index
    %c0_6 = arith.constant 0 : index
    %11 = vector.load %arg7[%c0_5, %c0_6] : memref<256x8xf32, #tpu.memory_space<vmem>>, vector<256x8xf32>
    tpu.vector_store %arg7[%c0_5, %c0_6], %10 {strides = array<i32>} : memref<256x8xf32, #tpu.memory_space<vmem>>, vector<256x8xf32>,
    %c0_i32_7 = arith.constant 0 : i32
    %12 = arith.cmpi eq, %arg1, %c0_i32_7 : i32
    %13 = arith.extui %12 : i1 to i32
    %c0_i32_8 = arith.constant 0 : i32
    %14 = arith.cmpi ne, %13, %c0_i32_8 : i32
    scf.if %14 {
      %c0_9 = arith.constant 0 : index
      %c0_10 = arith.constant 0 : index
      %15 = vector.load %arg7[%c0_9, %c0_10] : memref<256x8xf32, #tpu.memory_space<vmem>>, vector<256x8xf32>
      %16 = arith.truncf %15 : vector<256x8xf32> to vector<256x8xbf16>
      %c0_11 = arith.constant 0 : index
      %c0_12 = arith.constant 0 : index
      %17 = vector.load %arg4[%c0_11, %c0_12] : memref<8x128xbf16, #tpu.memory_space<vmem>>, vector<8x128xbf16>
      %cst_13 = arith.constant dense<0.000000e+00> : vector<256x128xf32>
      %18 = tpu.matmul %16, %17, %cst_13 {dimension_numbers = #tpu.dot_dimension_numbers<[1], [0], [0], [1], [0, 0, 1, 1], [], []>} : vector<256x8xbf16>, vector<8x128xbf16>, vector<256x128xf32> -> vector<256x128xf32>
      %19 = arith.truncf %18 : vector<256x128xf32> to vector<256x128xbf16>
      %c0_14 = arith.constant 0 : index
      %c0_15 = arith.constant 0 : index
      %20 = vector.load %arg5[%c0_14, %c0_15] : memref<256x128xbf16, #tpu.memory_space<vmem>>, vector<256x128xbf16>
      tpu.vector_store %arg5[%c0_14, %c0_15], %19 {strides = array<i32>} : memref<256x128xbf16, #tpu.memory_space<vmem>>, vector<256x128xbf16>,
      %cst_16 = arith.constant dense<0.000000e+00> : vector<128xf32>
      %21 = vector.multi_reduction <add>, %18, %cst_16 [0] : vector<256x128xf32> to vector<128xf32>
      %22 = vector.shape_cast %21 : vector<128xf32> to vector<1x128xf32>
      %c0_17 = arith.constant 0 : index
      %c0_18 = arith.constant 0 : index
      %23 = vector.load %arg6[%c0_17, %c0_18] : memref<8x128xf32, #tpu.memory_space<vmem>>, vector<1x128xf32>
      tpu.vector_store %arg6[%c0_17, %c0_18], %22 {strides = array<i32>} : memref<8x128xf32, #tpu.memory_space<vmem>>, vector<1x128xf32>,
      %24 = arith.mulf %18, %18 : vector<256x128xf32>
      %cst_19 = arith.constant dense<0.000000e+00> : vector<128xf32>
      %25 = vector.multi_reduction <add>, %24, %cst_19 [0] : vector<256x128xf32> to vector<128xf32>
      %26 = vector.shape_cast %25 : vector<128xf32> to vector<1x128xf32>
      %c1 = arith.constant 1 : index
      %c0_20 = arith.constant 0 : index
      %27 = vector.load %arg6[%c1, %c0_20] : memref<8x128xf32, #tpu.memory_space<vmem>>, vector<1x128xf32>
      tpu.vector_store %arg6[%c1, %c0_20], %26 {strides = array<i32>} : memref<8x128xf32, #tpu.memory_space<vmem>>, vector<1x128xf32>,
    } else {
    }
    return
  }
  func.func @transform_0(%arg0: i32, %arg1: i32) -> (i32, i32) {
    %c0_i32 = arith.constant 0 : i32
    return %arg0, %arg1 : i32, i32
  }
  func.func @transform_1(%arg0: i32, %arg1: i32) -> (i32, i32) {
    %c0_i32 = arith.constant 0 : i32
    %c0_i32_0 = arith.constant 0 : i32
    %c0_i32_1 = arith.constant 0 : i32
    return %c0_i32, %c0_i32_0 : i32, i32
  }
  func.func @transform_2(%arg0: i32, %arg1: i32) -> (i32, i32) {
    %c0_i32 = arith.constant 0 : i32
    %c0_i32_0 = arith.constant 0 : i32
    %c0_i32_1 = arith.constant 0 : i32
    return %c0_i32, %c0_i32_0 : i32, i32
  }
  func.func @transform_3(%arg0: i32, %arg1: i32) -> (i32, i32) {
    %c0_i32 = arith.constant 0 : i32
    %c0_i32_0 = arith.constant 0 : i32
    return %arg0, %c0_i32 : i32, i32
  }
  func.func @transform_4(%arg0: i32, %arg1: i32) -> (i32, i32) {
    %c0_i32 = arith.constant 0 : i32
    %c0_i32_0 = arith.constant 0 : i32
    return %arg0, %c0_i32 : i32, i32
  }
}

</mosaic_0001>

<bundles_post_ra>
// kernel: tpu_custom_call.1
= control target key start
LH: loop header
LB: loop body
LE: loop exit
PB: predicated region body
PF: predicated region fallthrough
CT: control target
= control target key end

     0   :  { %10 = vsyncpa [#allocation4], 0  ;;  %s1966_s0 = inlined_call_operand.hbm [shape: bf16[256,256], index: 0, kind: input, shape index: {}]   ;;  %s1967_s1 = inlined_call_operand.vmem [shape: bf16[256,8], index: 1, kind: input, shape index: {}]   ;;  %s1968_s2 = inlined_call_operand.vmem [shape: bf16[8,128], index: 2, kind: input, shape index: {}]   ;;  %s1969_s3 = inlined_call_operand.hbm [shape: bf16[256,128], index: 3, kind: output, shape index: {0}]   ;;  %s1970_s4 = inlined_call_operand.hbm [shape: f32[8,128], index: 4, kind: output, shape index: {1}]  }
   0x1   :  { %11 = vsyncpa [#allocation5], 0 }
   0x2   :  { %12 = vsyncpa [#allocation8], 0  ;;  %s1766_s15 = smov [#allocation3]   ;;  %s1694_s19 = scalar_lea.hbm %s1966_s0, 4096 }
   0x3   :  { %s18_s16 = sshll.u32 %s1766_s15, 4  ;;  %p1695_p0 = scmp.ne.s32.totalorder %s1966_s0, %s1694_s19  ;;  %s19_s16 = int_to_ptr.vmem [resolvable:$true] %s18_s16 }
   0x4   :  { %p1698_p1 = scmp.lt.u32.totalorder %s1694_s19, %s1966_s0 }
   0x6   :  { %p1700_p2 = pnand %p1698_p1, %p1695_p0 }
   0x8   :  { %1703 = shalt.err (!%p1700_p2)
}
   0x9   :  { %s1704_s24 = scalar_lea.vmem %s19_s16, 4096  ;;  %p1709_p4 = scmp.lt.s32.totalorder %s19_s16, %s19_s16 }
   0xa   :  { %p1705_p3 = scmp.ne.s32.totalorder %s19_s16, %s1704_s24  ;;  %p1710_p5 = scmp.lt.s32.totalorder %s1704_s24, %s1704_s24 }
   0xc   :  { %p1711_p6 = por %p1710_p5, %p1709_p4 }
   0xe   :  { %p1712_p7 = pnand %p1711_p6, %p1705_p3 }
  0x10   :  { %1715 = shalt.err (!%p1712_p7)
}
  0x11   :  { %s1767_s25 = smov 128   ;;  %s1768_s26 = smov 8  }
  0x12   :  { %24 = dma.hbm_to_vmem [thread:$0]  %s1966_s0, 4096, %s19_s16, [#allocation4], %s1767_s25, %s1767_s25, %s1768_s26  }
  0x13   :  { %1760 = dma.done.wait [#allocation4], 4096  }
  0x14   :  { %1761 = vsyncadd [#allocation4], 4294963200  ;;  %v1630_v0 = vld [vmem:[%s1967_s1 + $0x40] sm:$0xff]   ;;  %v1632_v2 = vld [vmem:[%s1967_s1 + $0x48] sm:$0xff]   ;;  %vm37_vm0 = vcmask 64512   ;;  %v1769_v47 = vmov 0.0  }
  0x15   :  { %v1631_v1 = vld [vmem:[%s1967_s1] sm:$0xff]   ;;  %1442 = vmatprep.subr.bf16.mxu0 %v1630_v0  ;;  %1605 = vmatprep.subr.bf16.mxu1 %v1630_v0  ;;  %v1633_v3 = vld [vmem:[%s1967_s1 + $0x8] sm:$0xff]   ;;  %v1634_v4 = vld [vmem:[%s1967_s1 + $0x50] sm:$0xff]   ;;  %38 = vst.msk [vmem:[#allocation2] sm:$0xff] %vm37_vm0, %v1769_v47  ;;  %vm753_vm1 = vcmask 1043456  }
  0x16   :  { %1443 = vmatpush3.bf16.msra.mxu0 %v1631_v1  ;;  %1613 = vmatpush3.bf16.msra.mxu1 %v1631_v1  ;;  %v1635_v5 = vld [vmem:[%s1967_s1 + $0x10] sm:$0xff]   ;;  %v1636_v6 = vld [vmem:[%s1967_s1 + $0x58] sm:$0xff]   ;;  %v1638_v8 = vld [vmem:[%s1967_s1 + $0x60] sm:$0xff]   ;;  %39 = vst.msk [vmem:[#allocation2 + $0x8] sm:$0xff] %vm37_vm0, %v1769_v47 }
  0x17   :  { %1444 = vmatprep.subr.bf16.mxu0 %v1632_v2  ;;  %1606 = vmatprep.subr.bf16.mxu1 %v1632_v2  ;;  %v1637_v7 = vld [vmem:[%s1967_s1 + $0x18] sm:$0xff]   ;;  %v1639_v9 = vld [vmem:[%s1967_s1 + $0x20] sm:$0xff]   ;;  %v1640_v10 = vld [vmem:[%s1967_s1 + $0x68] sm:$0xff]   ;;  %40 = vst.msk [vmem:[#allocation2 + $0x10] sm:$0xff] %vm37_vm0, %v1769_v47 }
  0x18   :  { %v1648_v11 = vld [vmem:[#allocation3 + $0x4] ss:$8 sps:$4 sm:$0xff]   ;;  %v1642_v13 = vld [vmem:[%s1967_s1 + $0x70] sm:$0xff]   ;;  %v1644_v15 = vld [vmem:[%s1967_s1 + $0x78] sm:$0xff]   ;;  %41 = vst.msk [vmem:[#allocation2 + $0x18] sm:$0xff] %vm37_vm0, %v1769_v47 }
  0x19   :  { %v1641_v12 = vld [vmem:[%s1967_s1 + $0x28] sm:$0xff]   ;;  %459 = vmatprep.mubr.bf16.mxu0 %v1648_v11  ;;  %v1643_v14 = vld [vmem:[%s1967_s1 + $0x30] sm:$0xff]   ;;  %v1645_v16 = vld [vmem:[%s1967_s1 + $0x38] sm:$0xff]   ;;  %42 = vst.msk [vmem:[#allocation2 + $0x20] sm:$0xff] %vm37_vm0, %v1769_v47 }
  0x1a   :  { %1445 = vmatpush3.bf16.msra.mxu0 %v1633_v3  ;;  %1614 = vmatpush3.bf16.msra.mxu1 %v1633_v3  ;;  %v1646_v17 = vld [vmem:[#allocation3] ss:$8 sps:$4 sm:$0xff]   ;;  %v1678_v18 = vld [vmem:[#allocation3 + $0xc4] ss:$8 sps:$4 sm:$0xff]   ;;  %v1649_v19 = vld [vmem:[#allocation3 + $0x14] ss:$8 sps:$4 sm:$0xff]  }
  0x1b   :  { %1446 = vmatprep.subr.bf16.mxu0 %v1634_v4  ;;  %1607 = vmatprep.subr.bf16.mxu1 %v1634_v4  ;;  %v1676_v20 = vld [vmem:[#allocation3 + $0xc0] ss:$8 sps:$4 sm:$0xff]   ;;  %v1682_v21 = vld [vmem:[#allocation3 + $0xd4] ss:$8 sps:$4 sm:$0xff]   ;;  %v1651_v22 = vld [vmem:[#allocation3 + $0x10] ss:$8 sps:$4 sm:$0xff]  }
  0x1c   :  { %555 = vmatprep.mubr.bf16.mxu1 %v1678_v18  ;;  %v1652_v23 = vld [vmem:[#allocation3 + $0x24] ss:$8 sps:$4 sm:$0xff]   ;;  %v1684_v24 = vld [vmem:[#allocation3 + $0xd0] ss:$8 sps:$4 sm:$0xff]   ;;  %v1654_v26 = vld [vmem:[#allocation3 + $0x20] ss:$8 sps:$4 sm:$0xff]  }
  0x1d   :  { %v1688_v25 = vld [vmem:[#allocation3 + $0xe4] ss:$8 sps:$4 sm:$0xff]   ;;  %v1655_v27 = vld [vmem:[#allocation3 + $0x34] ss:$8 sps:$4 sm:$0xff]   ;;  %v1690_v28 = vld [vmem:[#allocation3 + $0xe0] ss:$8 sps:$4 sm:$0xff]  }
  0x1e   :  { %1447 = vmatpush3.bf16.msra.mxu0 %v1635_v5  ;;  %1615 = vmatpush3.bf16.msra.mxu1 %v1635_v5  ;;  %v1691_v29 = vld [vmem:[#allocation3 + $0xf4] ss:$8 sps:$4 sm:$0xff]   ;;  %v1657_v30 = vld [vmem:[#allocation3 + $0x30] ss:$8 sps:$4 sm:$0xff]   ;;  %v1658_v31 = vld [vmem:[#allocation3 + $0x44] ss:$8 sps:$4 sm:$0xff]  }
  0x1f   :  { %1448 = vmatprep.subr.bf16.mxu0 %v1636_v6  ;;  %1608 = vmatprep.subr.bf16.mxu1 %v1636_v6  ;;  %v1693_v32 = vld [vmem:[#allocation3 + $0xf0] ss:$8 sps:$4 sm:$0xff]   ;;  %v1660_v33 = vld [vmem:[#allocation3 + $0x40] ss:$8 sps:$4 sm:$0xff]   ;;  %v1661_v34 = vld [vmem:[#allocation3 + $0x54] ss:$8 sps:$4 sm:$0xff]  }
  0x20   :  { %v1663_v35 = vld [vmem:[#allocation3 + $0x50] ss:$8 sps:$4 sm:$0xff]   ;;  %v1664_v36 = vld [vmem:[#allocation3 + $0x64] ss:$8 sps:$4 sm:$0xff]   ;;  %v1666_v37 = vld [vmem:[#allocation3 + $0x60] ss:$8 sps:$4 sm:$0xff]  }
  0x21   :  { %v1667_v38 = vld [vmem:[#allocation3 + $0x74] ss:$8 sps:$4 sm:$0xff]   ;;  %v1669_v39 = vld [vmem:[#allocation3 + $0x70] ss:$8 sps:$4 sm:$0xff]   ;;  %v1670_v40 = vld [vmem:[#allocation3 + $0x84] ss:$8 sps:$4 sm:$0xff]  }
  0x22   :  { %1449 = vmatpush3.bf16.msra.mxu0 %v1637_v7  ;;  %1616 = vmatpush3.bf16.msra.mxu1 %v1637_v7  ;;  %v1672_v41 = vld [vmem:[#allocation3 + $0x80] ss:$8 sps:$4 sm:$0xff]   ;;  %v1673_v42 = vld [vmem:[#allocation3 + $0x94] ss:$8 sps:$4 sm:$0xff]   ;;  %v1675_v43 = vld [vmem:[#allocation3 + $0x90] ss:$8 sps:$4 sm:$0xff]  }
  0x23   :  { %1450 = vmatprep.subr.bf16.mxu0 %v1638_v8  ;;  %1609 = vmatprep.subr.bf16.mxu1 %v1638_v8  ;;  %v1679_v44 = vld [vmem:[#allocation3 + $0xa4] ss:$8 sps:$4 sm:$0xff]   ;;  %v1681_v45 = vld [vmem:[#allocation3 + $0xa0] ss:$8 sps:$4 sm:$0xff]   ;;  %v1685_v46 = vld [vmem:[#allocation3 + $0xb4] ss:$8 sps:$4 sm:$0xff]  }
  0x24   :  { %43 = vst.msk [vmem:[#allocation2 + $0x28] sm:$0xff] %vm37_vm0, %v1769_v47  ;;  %44 = vst.msk [vmem:[#allocation2 + $0x30] sm:$0xff] %vm37_vm0, %v1769_v47  ;;  %v1687_v48 = vld [vmem:[#allocation3 + $0xb0] ss:$8 sps:$4 sm:$0xff]   ;;  %v704_v49 = vld [vmem:[%s1968_s2] sm:$0xf] }
  0x25   :  { %45 = vst.msk [vmem:[#allocation2 + $0x38] sm:$0xff] %vm37_vm0, %v1769_v47  ;;  %46 = vst.msk [vmem:[#allocation2 + $0x40] sm:$0xff] %vm37_vm0, %v1769_v47  ;;  %v755_v50 = vsel %vm753_vm1, %v704_v49, 0  ;;  %v107_v52 = vld [vmem:[#allocation2] sm:$0xff]  ;;  %v108_v59 = vld [vmem:[#allocation2 + $0x8] sm:$0xff]  ;;  %s1770_s2 = smov [#allocation6]  }
  0x26   :  { %1451 = vmatpush3.bf16.msra.mxu0 %v1639_v9  ;;  %1617 = vmatpush3.bf16.msra.mxu1 %v1639_v9  ;;  %47 = vst.msk [vmem:[#allocation2 + $0x48] sm:$0xff] %vm37_vm0, %v1769_v47  ;;  %48 = vst.msk [vmem:[#allocation2 + $0x50] sm:$0xff] %vm37_vm0, %v1769_v47  ;;  %v109_v8 = vld [vmem:[#allocation2 + $0x10] sm:$0xff]  ;;  %s1191_s9 = sshll.u32 %s1770_s2, 4  ;;  %s1192_s9 = int_to_ptr.vmem [resolvable:$true] %s1191_s9 }
  0x27   :  { %1452 = vmatprep.subr.bf16.mxu0 %v1640_v10  ;;  %1610 = vmatprep.subr.bf16.mxu1 %v1640_v10  ;;  %49 = vst.msk [vmem:[#allocation2 + $0x58] sm:$0xff] %vm37_vm0, %v1769_v47  ;;  %50 = vst.msk [vmem:[#allocation2 + $0x60] sm:$0xff] %vm37_vm0, %v1769_v47  ;;  %s1716_s10 = scalar_lea.vmem %s1192_s9, 2048  ;;  %p1721_p9 = scmp.lt.s32.totalorder %s1192_s9, %s1192_s9 }
  0x28   :  { %51 = vst.msk [vmem:[#allocation2 + $0x68] sm:$0xff] %vm37_vm0, %v1769_v47  ;;  %52 = vst.msk [vmem:[#allocation2 + $0x70] sm:$0xff] %vm37_vm0, %v1769_v47  ;;  %p1717_p8 = scmp.ne.s32.totalorder %s1192_s9, %s1716_s10  ;;  %p1722_p10 = scmp.lt.s32.totalorder %s1716_s10, %s1716_s10 }
  0x29   :  { %53 = vst.msk [vmem:[#allocation2 + $0x78] sm:$0xff] %vm37_vm0, %v1769_v47  ;;  %54 = vst.msk [vmem:[#allocation2 + $0x80] sm:$0xff] %vm37_vm0, %v1769_v47 }
  0x2a   :  { %1453 = vmatpush3.bf16.msra.mxu0 %v1641_v12  ;;  %1618 = vmatpush3.bf16.msra.mxu1 %v1641_v12  ;;  %55 = vst.msk [vmem:[#allocation2 + $0x88] sm:$0xff] %vm37_vm0, %v1769_v47  ;;  %56 = vst.msk [vmem:[#allocation2 + $0x90] sm:$0xff] %vm37_vm0, %v1769_v47  ;;  %p1723_p11 = por %p1722_p10, %p1721_p9 }
  0x2b   :  { %1454 = vmatprep.subr.bf16.mxu0 %v1642_v13  ;;  %1611 = vmatprep.subr.bf16.mxu1 %v1642_v13  ;;  %57 = vst.msk [vmem:[#allocation2 + $0x98] sm:$0xff] %vm37_vm0, %v1769_v47  ;;  %58 = vst.msk [vmem:[#allocation2 + $0xa0] sm:$0xff] %vm37_vm0, %v1769_v47 }
  0x2c   :  { %59 = vst.msk [vmem:[#allocation2 + $0xa8] sm:$0xff] %vm37_vm0, %v1769_v47  ;;  %60 = vst.msk [vmem:[#allocation2 + $0xb0] sm:$0xff] %vm37_vm0, %v1769_v47  ;;  %p1724_p12 = pnand %p1723_p11, %p1717_p8 }
  0x2d   :  { %61 = vst.msk [vmem:[#allocation2 + $0xb8] sm:$0xff] %vm37_vm0, %v1769_v47  ;;  %62 = vst.msk [vmem:[#allocation2 + $0xc0] sm:$0xff] %vm37_vm0, %v1769_v47 }
  0x2e   :  { %1455 = vmatpush3.bf16.msra.mxu0 %v1643_v14  ;;  %1619 = vmatpush3.bf16.msra.mxu1 %v1643_v14  ;;  %63 = vst.msk [vmem:[#allocation2 + $0xc8] sm:$0xff] %vm37_vm0, %v1769_v47  ;;  %64 = vst.msk [vmem:[#allocation2 + $0xd0] sm:$0xff] %vm37_vm0, %v1769_v47 }
  0x2f   :  { %1456 = vmatprep.subr.bf16.mxu0 %v1644_v15  ;;  %1612 = vmatprep.subr.bf16.mxu1 %v1644_v15  ;;  %65 = vst.msk [vmem:[#allocation2 + $0xd8] sm:$0xff] %vm37_vm0, %v1769_v47  ;;  %66 = vst.msk [vmem:[#allocation2 + $0xe0] sm:$0xff] %vm37_vm0, %v1769_v47  ;;  %v110_v15 = vld [vmem:[#allocation2 + $0x18] sm:$0xff] }
  0x30   :  { %67 = vst.msk [vmem:[#allocation2 + $0xe8] sm:$0xff] %vm37_vm0, %v1769_v47  ;;  %68 = vst.msk [vmem:[#allocation2 + $0xf0] sm:$0xff] %vm37_vm0, %v1769_v47 }
  0x31   :  { %69 = vst.msk [vmem:[#allocation2 + $0xf8] sm:$0xff] %vm37_vm0, %v1769_v47 }
  0x32   :  { %1457 = vmatpush3.bf16.msra.mxu0 %v1645_v16  ;;  %1620 = vmatpush3.bf16.msra.mxu1 %v1645_v16 }
  0x33   :  { %1621 = vmatprep.subr.msk.bf16.mxu1 %vm753_vm1, %v704_v49 }
  0x34   :  { %v131_v57 = vld [vmem:[#allocation2 + $0xc0] sm:$0xff] }
  0x35   :  { %460 = vmatmul.mubr.bf16.vlgmr.msra.gmra.mrb[0].mxu0 %v1646_v17  ;;  %556 = vmatmul.mubr.bf16.vlgmr.msra.gmra.mrb[0].mxu1 %v1676_v20  ;;  %v132_v1 = vld [vmem:[#allocation2 + $0xc8] sm:$0xff]  ;;  %v133_v13 = vld [vmem:[#allocation2 + $0xd0] sm:$0xff] }
  0x36   :  { %467 = vmatprep.mubr.bf16.mxu0 %v1649_v19  ;;  %563 = vmatprep.mubr.bf16.mxu1 %v1682_v21  ;;  %v134_v21 = vld [vmem:[#allocation2 + $0xd8] sm:$0xff] }
  0x37   :  { %1572 = vmatpush3.bf16.msra.mxu1 %v755_v50 }
  0x3d   :  { %468 = vmatmul.mubr.bf16.gmra.mrb[4].mxu0 %v1651_v22  ;;  %564 = vmatmul.mubr.bf16.gmra.mrb[4].mxu1 %v1684_v24 }
  0x3e   :  { %475 = vmatprep.mubr.bf16.mxu0 %v1652_v23  ;;  %571 = vmatprep.mubr.bf16.mxu1 %v1688_v25 }
  0x45   :  { %476 = vmatmul.mubr.bf16.gmra.mrb[8].mxu0 %v1654_v26  ;;  %572 = vmatmul.mubr.bf16.gmra.mrb[8].mxu1 %v1690_v28 }
  0x46   :  { %483 = vmatprep.mubr.bf16.mxu0 %v1655_v27  ;;  %579 = vmatprep.mubr.bf16.mxu1 %v1691_v29 }
  0x4d   :  { %484 = vmatmul.mubr.bf16.gmra.mrb[12].mxu0 %v1657_v30  ;;  %580 = vmatmul.mubr.bf16.gmra.mrb[12].mxu1 %v1693_v32 }
  0x4e   :  { %491 = vmatprep.mubr.bf16.mxu0 %v1658_v31  ;;  %v111_v31 = vld [vmem:[#allocation2 + $0x20] sm:$0xff] }
  0x55   :  { %492 = vmatmul.mubr.bf16.gmra.mrb[16].mxu0 %v1660_v33 }
  0x56   :  { %499 = vmatprep.mubr.bf16.mxu0 %v1661_v34 }
  0x5d   :  { %500 = vmatmul.mubr.bf16.gmra.mrb[20].mxu0 %v1663_v35 }
  0x5e   :  { %507 = vmatprep.mubr.bf16.mxu0 %v1664_v36  ;;  %v135_v36 = vld [vmem:[#allocation2 + $0xe0] sm:$0xff] }
  0x65   :  { %508 = vmatmul.mubr.bf16.gmra.mrb[24].mxu0 %v1666_v37 }
  0x66   :  { %515 = vmatprep.mubr.bf16.mxu0 %v1667_v38  ;;  %v112_v38 = vld [vmem:[#allocation2 + $0x28] sm:$0xff] }
  0x6d   :  { %516 = vmatmul.mubr.bf16.gmra.mrb[28].mxu0 %v1669_v39 }
  0x6e   :  { %523 = vmatprep.mubr.bf16.mxu0 %v1670_v40 }
  0x75   :  { %524 = vmatmul.mubr.bf16.gmra.mrb[32].mxu0 %v1672_v41 }
  0x76   :  { %531 = vmatprep.mubr.bf16.mxu0 %v1673_v42 }
  0x7d   :  { %532 = vmatmul.mubr.bf16.gmra.mrb[36].mxu0 %v1675_v43 }
  0x7e   :  { %539 = vmatprep.mubr.bf16.mxu0 %v1679_v44  ;;  %v136_v44 = vld [vmem:[#allocation2 + $0xe8] sm:$0xff] }
  0x85   :  { %540 = vmatmul.mubr.bf16.gmra.mrb[40].mxu0 %v1681_v45 }
  0x86   :  { %547 = vmatprep.mubr.bf16.mxu0 %v1685_v46 }
  0x8d   :  { %548 = vmatmul.mubr.bf16.gmra.mrb[44].mxu0 %v1687_v48 }
 0x108   :  { %v1458_v51 = vpop.f32.mrb[0].mxu0  ;;  %v1530_v54 = vpop.f32.mrb[0].mxu1 }
 0x109   :  { %v1459_v53 = vpop.f32.mrb[1].mxu0  ;;  %v1531_v58 = vpop.f32.mrb[1].mxu1 }
 0x10a   :  { %v1460_v55 = vadd.f32 %v1459_v53, %v1458_v51  ;;  %v1461_v56 = vpop.f32.mrb[2].mxu0  ;;  %v1532_v61 = vadd.f32 %v1531_v58, %v1530_v54  ;;  %v1533_v62 = vpop.f32.mrb[2].mxu1  ;;  %v113_v54 = vld [vmem:[#allocation2 + $0x30] sm:$0xff] }
 0x10b   :  { %v1462_v60 = vpop.f32.mrb[3].mxu0  ;;  %v1534_v2 = vpop.f32.mrb[3].mxu1 }
 0x10c   :  { %v588_v63 = vadd.f32 %v1460_v55, %v107_v52  ;;  %v1463_v0 = vadd.f32 %v1462_v60, %v1461_v56  ;;  %v612_v3 = vadd.f32 %v1532_v61, %v131_v57  ;;  %v1535_v4 = vadd.f32 %v1534_v2, %v1533_v62  ;;  %v114_v61 = vld [vmem:[#allocation2 + $0x38] sm:$0xff] }
 0x10e   :  { %621 = vst.msk [vmem:[#allocation2] sm:$0xff] %vm37_vm0, %v588_v63  ;;  %v589_v5 = vadd.f32 %v1463_v0, %v108_v59  ;;  %645 = vst.msk [vmem:[#allocation2 + $0xc0] sm:$0xff] %vm37_vm0, %v612_v3  ;;  %v613_v6 = vadd.f32 %v1535_v4, %v132_v1  ;;  %v137_v59 = vld [vmem:[#allocation2 + $0xf0] sm:$0xff]  ;;  %v138_v3 = vld [vmem:[#allocation2 + $0xf8] sm:$0xff] }
 0x110   :  { %622 = vst.msk [vmem:[#allocation2 + $0x8] sm:$0xff] %vm37_vm0, %v589_v5  ;;  %v1464_v7 = vpop.f32.mrb[4].mxu0  ;;  %646 = vst.msk [vmem:[#allocation2 + $0xc8] sm:$0xff] %vm37_vm0, %v613_v6  ;;  %v1536_v10 = vpop.f32.mrb[4].mxu1 }
 0x111   :  { %v1465_v9 = vpop.f32.mrb[5].mxu0  ;;  %v1537_v14 = vpop.f32.mrb[5].mxu1 }
 0x112   :  { %v1466_v11 = vadd.f32 %v1465_v9, %v1464_v7  ;;  %v1467_v12 = vpop.f32.mrb[6].mxu0  ;;  %v1538_v17 = vadd.f32 %v1537_v14, %v1536_v10  ;;  %v1539_v18 = vpop.f32.mrb[6].mxu1 }
 0x113   :  { %v1468_v16 = vpop.f32.mrb[7].mxu0  ;;  %v1540_v22 = vpop.f32.mrb[7].mxu1 }
 0x114   :  { %v590_v19 = vadd.f32 %v1466_v11, %v109_v8  ;;  %v1469_v20 = vadd.f32 %v1468_v16, %v1467_v12  ;;  %v614_v23 = vadd.f32 %v1538_v17, %v133_v13  ;;  %v1541_v24 = vadd.f32 %v1540_v22, %v1539_v18  ;;  %v115_v13 = vld [vmem:[#allocation2 + $0x40] sm:$0xff]  ;;  %v116_v17 = vld [vmem:[#allocation2 + $0x48] sm:$0xff] }
 0x115   :  { %v656_v26 = vld [vmem:[#allocation2] sm:$0xff] }
 0x116   :  { %623 = vst.msk [vmem:[#allocation2 + $0x10] sm:$0xff] %vm37_vm0, %v590_v19  ;;  %v591_v25 = vadd.f32 %v1469_v20, %v110_v15  ;;  %647 = vst.msk [vmem:[#allocation2 + $0xd0] sm:$0xff] %vm37_vm0, %v614_v23  ;;  %v615_v28 = vadd.f32 %v1541_v24, %v134_v21 }
 0x117   :  { %v657_v27 = vld [vmem:[#allocation2 + $0x8] sm:$0xff] }
 0x118   :  { %624 = vst.msk [vmem:[#allocation2 + $0x18] sm:$0xff] %vm37_vm0, %v591_v25  ;;  %v1470_v29 = vpop.f32.mrb[8].mxu0  ;;  %v688_v30 = vpack.c.bf16 %v657_v27, %v656_v26  ;;  %648 = vst.msk [vmem:[#allocation2 + $0xd8] sm:$0xff] %vm37_vm0, %v615_v28  ;;  %v1542_v33 = vpop.f32.mrb[8].mxu1  ;;  %v117_v26 = vld [vmem:[#allocation2 + $0x50] sm:$0xff] }
 0x119   :  { %v1471_v32 = vpop.f32.mrb[9].mxu0  ;;  %v1543_v37 = vpop.f32.mrb[9].mxu1 }
 0x11a   :  { %v1472_v34 = vadd.f32 %v1471_v32, %v1470_v29  ;;  %v1473_v35 = vpop.f32.mrb[10].mxu0  ;;  %1573 = vmatprep.mubr.msk.bf16.mxu1 %vm37_vm0, %v688_v30  ;;  %v1544_v40 = vadd.f32 %v1543_v37, %v1542_v33  ;;  %v1545_v41 = vpop.f32.mrb[10].mxu1  ;;  %v118_v30 = vld [vmem:[#allocation2 + $0x58] sm:$0xff] }
 0x11b   :  { %v1474_v39 = vpop.f32.mrb[11].mxu0  ;;  %v1546_v45 = vpop.f32.mrb[11].mxu1 }
 0x11c   :  { %v592_v42 = vadd.f32 %v1472_v34, %v111_v31  ;;  %v1475_v43 = vadd.f32 %v1474_v39, %v1473_v35  ;;  %v616_v46 = vadd.f32 %v1544_v40, %v135_v36  ;;  %v1547_v47 = vadd.f32 %v1546_v45, %v1545_v41  ;;  %v119_v39 = vld [vmem:[#allocation2 + $0x60] sm:$0xff] }
 0x11d   :  { %v658_v49 = vld [vmem:[#allocation2 + $0x10] sm:$0xff] }
 0x11e   :  { %625 = vst.msk [vmem:[#allocation2 + $0x20] sm:$0xff] %vm37_vm0, %v592_v42  ;;  %v593_v48 = vadd.f32 %v1475_v43, %v112_v38  ;;  %649 = vst.msk [vmem:[#allocation2 + $0xe0] sm:$0xff] %vm37_vm0, %v616_v46  ;;  %v617_v51 = vadd.f32 %v1547_v47, %v136_v44  ;;  %v120_v43 = vld [vmem:[#allocation2 + $0x68] sm:$0xff] }
 0x11f   :  { %v659_v50 = vld [vmem:[#allocation2 + $0x18] sm:$0xff] }
 0x120   :  { %626 = vst.msk [vmem:[#allocation2 + $0x28] sm:$0xff] %vm37_vm0, %v593_v48  ;;  %v1476_v52 = vpop.f32.mrb[12].mxu0  ;;  %v689_v53 = vpack.c.bf16 %v659_v50, %v658_v49  ;;  %650 = vst.msk [vmem:[#allocation2 + $0xe8] sm:$0xff] %vm37_vm0, %v617_v51  ;;  %v1548_v56 = vpop.f32.mrb[12].mxu1 }
 0x121   :  { %v1477_v55 = vpop.f32.mrb[13].mxu0  ;;  %v1549_v60 = vpop.f32.mrb[13].mxu1 }
 0x122   :  { %v1478_v57 = vadd.f32 %v1477_v55, %v1476_v52  ;;  %v1479_v58 = vpop.f32.mrb[14].mxu0  ;;  %1574 = vmatmul.mubr.msk.bf16.vlgmr.msra.gmra.mrb[16].mxu1 %vm37_vm0, %v689_v53  ;;  %v1550_v63 = vadd.f32 %v1549_v60, %v1548_v56  ;;  %v1551_v0 = vpop.f32.mrb[14].mxu1  ;;  %v121_v52 = vld [vmem:[#allocation2 + $0x70] sm:$0xff]  ;;  %v122_v56 = vld [vmem:[#allocation2 + $0x78] sm:$0xff] }
 0x123   :  { %v1480_v62 = vpop.f32.mrb[15].mxu0  ;;  %v1552_v4 = vpop.f32.mrb[15].mxu1 }
 0x124   :  { %v594_v1 = vadd.f32 %v1478_v57, %v113_v54  ;;  %v1481_v2 = vadd.f32 %v1480_v62, %v1479_v58  ;;  %v618_v5 = vadd.f32 %v1550_v63, %v137_v59  ;;  %v1553_v6 = vadd.f32 %v1552_v4, %v1551_v0 }
 0x125   :  { %v660_v8 = vld [vmem:[#allocation2 + $0x20] sm:$0xff] }
 0x126   :  { %627 = vst.msk [vmem:[#allocation2 + $0x30] sm:$0xff] %vm37_vm0, %v594_v1  ;;  %v595_v7 = vadd.f32 %v1481_v2, %v114_v61  ;;  %651 = vst.msk [vmem:[#allocation2 + $0xf0] sm:$0xff] %vm37_vm0, %v618_v5  ;;  %v619_v10 = vadd.f32 %v1553_v6, %v138_v3  ;;  %v123_v1 = vld [vmem:[#allocation2 + $0x80] sm:$0xff]  ;;  %v124_v5 = vld [vmem:[#allocation2 + $0x88] sm:$0xff] }
 0x127   :  { %v661_v9 = vld [vmem:[#allocation2 + $0x28] sm:$0xff] }
 0x128   :  { %628 = vst.msk [vmem:[#allocation2 + $0x38] sm:$0xff] %vm37_vm0, %v595_v7  ;;  %v1482_v11 = vpop.f32.mrb[16].mxu0  ;;  %v690_v12 = vpack.c.bf16 %v661_v9, %v660_v8  ;;  %652 = vst.msk [vmem:[#allocation2 + $0xf8] sm:$0xff] %vm37_vm0, %v619_v10 }
 0x129   :  { %v1483_v14 = vpop.f32.mrb[17].mxu0 }
 0x12a   :  { %v1484_v15 = vadd.f32 %v1483_v14, %v1482_v11  ;;  %v1485_v16 = vpop.f32.mrb[18].mxu0  ;;  %1577 = vmatprep.mubr.msk.bf16.mxu1 %vm37_vm0, %v690_v12  ;;  %v125_v14 = vld [vmem:[#allocation2 + $0x90] sm:$0xff] }
 0x12b   :  { %v1486_v18 = vpop.f32.mrb[19].mxu0 }
 0x12c   :  { %v596_v19 = vadd.f32 %v1484_v15, %v115_v13  ;;  %v1487_v20 = vadd.f32 %v1486_v18, %v1485_v16  ;;  %v126_v18 = vld [vmem:[#allocation2 + $0x98] sm:$0xff] }
 0x12d   :  { %v662_v22 = vld [vmem:[#allocation2 + $0x30] sm:$0xff] }
 0x12e   :  { %629 = vst.msk [vmem:[#allocation2 + $0x40] sm:$0xff] %vm37_vm0, %v596_v19  ;;  %v597_v21 = vadd.f32 %v1487_v20, %v116_v17 }
 0x12f   :  { %v663_v23 = vld [vmem:[#allocation2 + $0x38] sm:$0xff] }
 0x130   :  { %630 = vst.msk [vmem:[#allocation2 + $0x48] sm:$0xff] %vm37_vm0, %v597_v21  ;;  %v1488_v24 = vpop.f32.mrb[20].mxu0  ;;  %v691_v25 = vpack.c.bf16 %v663_v23, %v662_v22 }
 0x131   :  { %v1489_v27 = vpop.f32.mrb[21].mxu0 }
 0x132   :  { %v1490_v28 = vadd.f32 %v1489_v27, %v1488_v24  ;;  %v1491_v29 = vpop.f32.mrb[22].mxu0  ;;  %1578 = vmatmul.mubr.msk.bf16.gmra.mrb[20].mxu1 %vm37_vm0, %v691_v25  ;;  %v127_v27 = vld [vmem:[#allocation2 + $0xa0] sm:$0xff] }
 0x133   :  { %v1492_v31 = vpop.f32.mrb[23].mxu0 }
 0x134   :  { %v598_v32 = vadd.f32 %v1490_v28, %v117_v26  ;;  %v1493_v33 = vadd.f32 %v1492_v31, %v1491_v29  ;;  %v128_v31 = vld [vmem:[#allocation2 + $0xa8] sm:$0xff] }
 0x135   :  { %v664_v35 = vld [vmem:[#allocation2 + $0x40] sm:$0xff] }
 0x136   :  { %631 = vst.msk [vmem:[#allocation2 + $0x50] sm:$0xff] %vm37_vm0, %v598_v32  ;;  %v599_v34 = vadd.f32 %v1493_v33, %v118_v30 }
 0x137   :  { %v665_v36 = vld [vmem:[#allocation2 + $0x48] sm:$0xff] }
 0x138   :  { %632 = vst.msk [vmem:[#allocation2 + $0x58] sm:$0xff] %vm37_vm0, %v599_v34  ;;  %v1494_v37 = vpop.f32.mrb[24].mxu0  ;;  %v692_v38 = vpack.c.bf16 %v665_v36, %v664_v35 }
 0x139   :  { %v1495_v40 = vpop.f32.mrb[25].mxu0 }
 0x13a   :  { %v1496_v41 = vadd.f32 %v1495_v40, %v1494_v37  ;;  %v1497_v42 = vpop.f32.mrb[26].mxu0  ;;  %1581 = vmatprep.mubr.msk.bf16.mxu1 %vm37_vm0, %v692_v38  ;;  %v129_v40 = vld [vmem:[#allocation2 + $0xb0] sm:$0xff] }
 0x13b   :  { %v1498_v44 = vpop.f32.mrb[27].mxu0 }
 0x13c   :  { %v600_v45 = vadd.f32 %v1496_v41, %v119_v39  ;;  %v1499_v46 = vadd.f32 %v1498_v44, %v1497_v42  ;;  %v130_v44 = vld [vmem:[#allocation2 + $0xb8] sm:$0xff] }
 0x13d   :  { %v666_v48 = vld [vmem:[#allocation2 + $0x50] sm:$0xff] }
 0x13e   :  { %633 = vst.msk [vmem:[#allocation2 + $0x60] sm:$0xff] %vm37_vm0, %v600_v45  ;;  %v601_v47 = vadd.f32 %v1499_v46, %v120_v43 }
 0x13f   :  { %v667_v49 = vld [vmem:[#allocation2 + $0x58] sm:$0xff] }
 0x140   :  { %634 = vst.msk [vmem:[#allocation2 + $0x68] sm:$0xff] %vm37_vm0, %v601_v47  ;;  %v1500_v50 = vpop.f32.mrb[28].mxu0  ;;  %v693_v51 = vpack.c.bf16 %v667_v49, %v666_v48 }
 0x141   :  { %v1501_v53 = vpop.f32.mrb[29].mxu0 }
 0x142   :  { %v1502_v54 = vadd.f32 %v1501_v53, %v1500_v50  ;;  %v1503_v55 = vpop.f32.mrb[30].mxu0  ;;  %1582 = vmatmul.mubr.msk.bf16.gmra.mrb[24].mxu1 %vm37_vm0, %v693_v51  ;;  %v681_v53 = vld [vmem:[#allocation2 + $0xc8] sm:$0xff] }
 0x143   :  { %v1504_v57 = vpop.f32.mrb[31].mxu0 }
 0x144   :  { %v602_v58 = vadd.f32 %v1502_v54, %v121_v52  ;;  %v1505_v59 = vadd.f32 %v1504_v57, %v1503_v55  ;;  %v680_v52 = vld [vmem:[#allocation2 + $0xc0] sm:$0xff] }
 0x145   :  { %v668_v61 = vld [vmem:[#allocation2 + $0x60] sm:$0xff]  ;;  %v700_v57 = vpack.c.bf16 %v681_v53, %v680_v52 }
 0x146   :  { %635 = vst.msk [vmem:[#allocation2 + $0x70] sm:$0xff] %vm37_vm0, %v602_v58  ;;  %v603_v60 = vadd.f32 %v1505_v59, %v122_v56  ;;  %v682_v58 = vld [vmem:[#allocation2 + $0xd0] sm:$0xff]  ;;  %v683_v59 = vld [vmem:[#allocation2 + $0xd8] sm:$0xff] }
 0x147   :  { %v669_v62 = vld [vmem:[#allocation2 + $0x68] sm:$0xff] }
 0x148   :  { %636 = vst.msk [vmem:[#allocation2 + $0x78] sm:$0xff] %vm37_vm0, %v603_v60  ;;  %v1506_v63 = vpop.f32.mrb[32].mxu0  ;;  %v694_v0 = vpack.c.bf16 %v669_v62, %v668_v61  ;;  %v684_v60 = vld [vmem:[#allocation2 + $0xe0] sm:$0xff]  ;;  %v685_v61 = vld [vmem:[#allocation2 + $0xe8] sm:$0xff]  ;;  %v701_v62 = vpack.c.bf16 %v683_v59, %v682_v58 }
 0x149   :  { %v1507_v2 = vpop.f32.mrb[33].mxu0 }
 0x14a   :  { %v1508_v3 = vadd.f32 %v1507_v2, %v1506_v63  ;;  %v1509_v4 = vpop.f32.mrb[34].mxu0  ;;  %1585 = vmatprep.mubr.msk.bf16.mxu1 %vm37_vm0, %v694_v0  ;;  %v702_v63 = vpack.c.bf16 %v685_v61, %v684_v60  ;;  %v686_v0 = vld [vmem:[#allocation2 + $0xf0] sm:$0xff] }
 0x14b   :  { %v1510_v6 = vpop.f32.mrb[35].mxu0 }
 0x14c   :  { %v604_v7 = vadd.f32 %v1508_v3, %v123_v1  ;;  %v1511_v8 = vadd.f32 %v1510_v6, %v1509_v4  ;;  %v687_v1 = vld [vmem:[#allocation2 + $0xf8] sm:$0xff] }
 0x14d   :  { %v670_v10 = vld [vmem:[#allocation2 + $0x70] sm:$0xff]  ;;  %v703_v2 = vpack.c.bf16 %v687_v1, %v686_v0 }
 0x14e   :  { %637 = vst.msk [vmem:[#allocation2 + $0x80] sm:$0xff] %vm37_vm0, %v604_v7  ;;  %v605_v9 = vadd.f32 %v1511_v8, %v124_v5 }
 0x14f   :  { %v671_v11 = vld [vmem:[#allocation2 + $0x78] sm:$0xff] }
 0x150   :  { %638 = vst.msk [vmem:[#allocation2 + $0x88] sm:$0xff] %vm37_vm0, %v605_v9  ;;  %v1512_v12 = vpop.f32.mrb[36].mxu0  ;;  %v695_v13 = vpack.c.bf16 %v671_v11, %v670_v10 }
 0x151   :  { %v1513_v15 = vpop.f32.mrb[37].mxu0 }
 0x152   :  { %v1514_v16 = vadd.f32 %v1513_v15, %v1512_v12  ;;  %v1515_v17 = vpop.f32.mrb[38].mxu0  ;;  %1586 = vmatmul.mubr.msk.bf16.gmra.mrb[28].mxu1 %vm37_vm0, %v695_v13 }
 0x153   :  { %v1516_v19 = vpop.f32.mrb[39].mxu0 }
 0x154   :  { %v606_v20 = vadd.f32 %v1514_v16, %v125_v14  ;;  %v1517_v21 = vadd.f32 %v1516_v19, %v1515_v17 }
 0x155   :  { %v672_v23 = vld [vmem:[#allocation2 + $0x80] sm:$0xff] }
 0x156   :  { %639 = vst.msk [vmem:[#allocation2 + $0x90] sm:$0xff] %vm37_vm0, %v606_v20  ;;  %v607_v22 = vadd.f32 %v1517_v21, %v126_v18 }
 0x157   :  { %v673_v24 = vld [vmem:[#allocation2 + $0x88] sm:$0xff] }
 0x158   :  { %640 = vst.msk [vmem:[#allocation2 + $0x98] sm:$0xff] %vm37_vm0, %v607_v22  ;;  %v1518_v25 = vpop.f32.mrb[40].mxu0  ;;  %v696_v26 = vpack.c.bf16 %v673_v24, %v672_v23 }
 0x159   :  { %v1519_v28 = vpop.f32.mrb[41].mxu0 }
 0x15a   :  { %v1520_v29 = vadd.f32 %v1519_v28, %v1518_v25  ;;  %v1521_v30 = vpop.f32.mrb[42].mxu0  ;;  %1589 = vmatprep.mubr.msk.bf16.mxu1 %vm37_vm0, %v696_v26 }
 0x15b   :  { %v1522_v32 = vpop.f32.mrb[43].mxu0 }
 0x15c   :  { %v608_v33 = vadd.f32 %v1520_v29, %v127_v27  ;;  %v1523_v34 = vadd.f32 %v1522_v32, %v1521_v30 }
 0x15d   :  { %v674_v36 = vld [vmem:[#allocation2 + $0x90] sm:$0xff] }
 0x15e   :  { %641 = vst.msk [vmem:[#allocation2 + $0xa0] sm:$0xff] %vm37_vm0, %v608_v33  ;;  %v609_v35 = vadd.f32 %v1523_v34, %v128_v31 }
 0x15f   :  { %v675_v37 = vld [vmem:[#allocation2 + $0x98] sm:$0xff] }
 0x160   :  { %642 = vst.msk [vmem:[#allocation2 + $0xa8] sm:$0xff] %vm37_vm0, %v609_v35  ;;  %v1524_v38 = vpop.f32.mrb[44].mxu0  ;;  %v697_v39 = vpack.c.bf16 %v675_v37, %v674_v36 }
 0x161   :  { %v1525_v41 = vpop.f32.mrb[45].mxu0 }
 0x162   :  { %v1526_v42 = vadd.f32 %v1525_v41, %v1524_v38  ;;  %v1527_v43 = vpop.f32.mrb[46].mxu0  ;;  %1590 = vmatmul.mubr.msk.bf16.gmra.mrb[32].mxu1 %vm37_vm0, %v697_v39 }
 0x163   :  { %v1528_v45 = vpop.f32.mrb[47].mxu0 }
 0x164   :  { %v610_v46 = vadd.f32 %v1526_v42, %v129_v40  ;;  %v1529_v47 = vadd.f32 %v1528_v45, %v1527_v43 }
 0x165   :  { %v676_v49 = vld [vmem:[#allocation2 + $0xa0] sm:$0xff] }
 0x166   :  { %643 = vst.msk [vmem:[#allocation2 + $0xb0] sm:$0xff] %vm37_vm0, %v610_v46  ;;  %v611_v48 = vadd.f32 %v1529_v47, %v130_v44 }
 0x167   :  { %v677_v50 = vld [vmem:[#allocation2 + $0xa8] sm:$0xff] }
 0x168   :  { %644 = vst.msk [vmem:[#allocation2 + $0xb8] sm:$0xff] %vm37_vm0, %v611_v48  ;;  %v698_v51 = vpack.c.bf16 %v677_v50, %v676_v49 }
 0x16a   :  { %1593 = vmatprep.mubr.msk.bf16.mxu1 %vm37_vm0, %v698_v51 }
 0x16d   :  { %v678_v54 = vld [vmem:[#allocation2 + $0xb0] sm:$0xff] }
 0x16f   :  { %v679_v55 = vld [vmem:[#allocation2 + $0xb8] sm:$0xff] }
 0x170   :  { %v699_v56 = vpack.c.bf16 %v679_v55, %v678_v54 }
 0x172   :  { %1594 = vmatmul.mubr.msk.bf16.gmra.mrb[36].mxu1 %vm37_vm0, %v699_v56 }
 0x173   :  { %1597 = vmatprep.mubr.msk.bf16.mxu1 %vm37_vm0, %v700_v57 }
 0x17a   :  { %1598 = vmatmul.mubr.msk.bf16.gmra.mrb[40].mxu1 %vm37_vm0, %v701_v62 }
 0x17b   :  { %1601 = vmatprep.mubr.msk.bf16.mxu1 %vm37_vm0, %v702_v63 }
 0x182   :  { %1602 = vmatmul.mubr.msk.bf16.gmra.mrb[44].mxu1 %vm37_vm0, %v703_v2 }
 0x1f5   :  { %v1575_v3 = vpop.f32.mrb[16].mxu1 }
 0x1f6   :  { %v791_v4 = vpop.f32.mrb[17].mxu1  ;;  %v1118_v12 = vmul.f32 %v1575_v3, %v1575_v3 }
 0x1f7   :  { %v1576_v5 = vpop.f32.mrb[18].mxu1  ;;  %v1116_v8 = vmul.f32 %v791_v4, %v791_v4 }
 0x1f8   :  { %v1355_v6 = vpack.c.bf16 %v1576_v5, %v1575_v3  ;;  %v794_v7 = vpop.f32.mrb[19].mxu1  ;;  %v1119_v15 = vmul.f32 %v1576_v5, %v1576_v5 }
 0x1f9   :  { %v1350_v9 = vpack.c.bf16 %v794_v7, %v791_v4  ;;  %v1078_v10 = vadd.f32 %v794_v7, %v791_v4  ;;  %v1117_v11 = vmul.f32 %v794_v7, %v794_v7 }
 0x1fa   :  { %1427 = vst [vmem:[#allocation6 + $0x8] sm:$0xff] %v1355_v6  }
 0x1fb   :  { %1351 = vst [vmem:[#allocation6] sm:$0xff] %v1350_v9   ;;  %v1079_v13 = vadd.f32 %v1575_v3, %v1078_v10  ;;  %v1148_v14 = vadd.f32 %v1117_v11, %v1116_v8 }
 0x1fd   :  { %v1149_v16 = vadd.f32 %v1148_v14, %v1118_v12  ;;  %v1080_v17 = vadd.f32 %v1576_v5, %v1079_v13 }
 0x1ff   :  { %v1150_v18 = vadd.f32 %v1149_v16, %v1119_v15 }
 0x205   :  { %v1579_v19 = vpop.f32.mrb[20].mxu1 }
 0x206   :  { %v807_v20 = vpop.f32.mrb[21].mxu1  ;;  %v1122_v30 = vmul.f32 %v1579_v19, %v1579_v19 }
 0x207   :  { %v1081_v21 = vadd.f32 %v1080_v17, %v807_v20  ;;  %v1120_v22 = vmul.f32 %v807_v20, %v807_v20  ;;  %v1580_v23 = vpop.f32.mrb[22].mxu1 }
 0x208   :  { %v1365_v24 = vpack.c.bf16 %v1580_v23, %v1579_v19  ;;  %v810_v25 = vpop.f32.mrb[23].mxu1  ;;  %v1123_v33 = vmul.f32 %v1580_v23, %v1580_v23 }
 0x209   :  { %v1151_v26 = vadd.f32 %v1150_v18, %v1120_v22  ;;  %v1360_v27 = vpack.c.bf16 %v810_v25, %v807_v20  ;;  %v1082_v28 = vadd.f32 %v1081_v21, %v810_v25  ;;  %v1121_v29 = vmul.f32 %v810_v25, %v810_v25 }
 0x20a   :  { %1429 = vst [vmem:[#allocation6 + $0x18] sm:$0xff] %v1365_v24  }
 0x20b   :  { %1428 = vst [vmem:[#allocation6 + $0x10] sm:$0xff] %v1360_v27   ;;  %v1083_v31 = vadd.f32 %v1579_v19, %v1082_v28  ;;  %v1152_v32 = vadd.f32 %v1151_v26, %v1121_v29 }
 0x20d   :  { %v1153_v34 = vadd.f32 %v1152_v32, %v1122_v30  ;;  %v1084_v35 = vadd.f32 %v1580_v23, %v1083_v31 }
 0x20f   :  { %v1154_v36 = vadd.f32 %v1153_v34, %v1123_v33 }
 0x215   :  { %v1583_v37 = vpop.f32.mrb[24].mxu1 }
 0x216   :  { %v823_v38 = vpop.f32.mrb[25].mxu1  ;;  %v1126_v48 = vmul.f32 %v1583_v37, %v1583_v37 }
 0x217   :  { %v1085_v39 = vadd.f32 %v1084_v35, %v823_v38  ;;  %v1124_v40 = vmul.f32 %v823_v38, %v823_v38  ;;  %v1584_v41 = vpop.f32.mrb[26].mxu1 }
 0x218   :  { %v1375_v42 = vpack.c.bf16 %v1584_v41, %v1583_v37  ;;  %v826_v43 = vpop.f32.mrb[27].mxu1  ;;  %v1127_v51 = vmul.f32 %v1584_v41, %v1584_v41 }
 0x219   :  { %v1155_v44 = vadd.f32 %v1154_v36, %v1124_v40  ;;  %v1370_v45 = vpack.c.bf16 %v826_v43, %v823_v38  ;;  %v1086_v46 = vadd.f32 %v1085_v39, %v826_v43  ;;  %v1125_v47 = vmul.f32 %v826_v43, %v826_v43 }
 0x21a   :  { %1431 = vst [vmem:[#allocation6 + $0x28] sm:$0xff] %v1375_v42  }
 0x21b   :  { %1430 = vst [vmem:[#allocation6 + $0x20] sm:$0xff] %v1370_v45   ;;  %v1087_v49 = vadd.f32 %v1583_v37, %v1086_v46  ;;  %v1156_v50 = vadd.f32 %v1155_v44, %v1125_v47 }
 0x21d   :  { %v1157_v52 = vadd.f32 %v1156_v50, %v1126_v48  ;;  %v1088_v53 = vadd.f32 %v1584_v41, %v1087_v49 }
 0x21f   :  { %v1158_v54 = vadd.f32 %v1157_v52, %v1127_v51 }
 0x225   :  { %v1587_v55 = vpop.f32.mrb[28].mxu1 }
 0x226   :  { %v839_v56 = vpop.f32.mrb[29].mxu1  ;;  %v1130_v2 = vmul.f32 %v1587_v55, %v1587_v55 }
 0x227   :  { %v1089_v57 = vadd.f32 %v1088_v53, %v839_v56  ;;  %v1128_v58 = vmul.f32 %v839_v56, %v839_v56  ;;  %v1588_v59 = vpop.f32.mrb[30].mxu1 }
 0x228   :  { %v1385_v60 = vpack.c.bf16 %v1588_v59, %v1587_v55  ;;  %v842_v61 = vpop.f32.mrb[31].mxu1  ;;  %v1131_v5 = vmul.f32 %v1588_v59, %v1588_v59 }
 0x229   :  { %v1159_v62 = vadd.f32 %v1158_v54, %v1128_v58  ;;  %v1380_v63 = vpack.c.bf16 %v842_v61, %v839_v56  ;;  %v1090_v0 = vadd.f32 %v1089_v57, %v842_v61  ;;  %v1129_v1 = vmul.f32 %v842_v61, %v842_v61 }
 0x22a   :  { %1433 = vst [vmem:[#allocation6 + $0x38] sm:$0xff] %v1385_v60  }
 0x22b   :  { %1432 = vst [vmem:[#allocation6 + $0x30] sm:$0xff] %v1380_v63   ;;  %v1091_v3 = vadd.f32 %v1587_v55, %v1090_v0  ;;  %v1160_v4 = vadd.f32 %v1159_v62, %v1129_v1 }
 0x22d   :  { %v1161_v6 = vadd.f32 %v1160_v4, %v1130_v2  ;;  %v1092_v7 = vadd.f32 %v1588_v59, %v1091_v3 }
 0x22f   :  { %v1162_v8 = vadd.f32 %v1161_v6, %v1131_v5 }
 0x235   :  { %v1591_v9 = vpop.f32.mrb[32].mxu1 }
 0x236   :  { %v855_v10 = vpop.f32.mrb[33].mxu1  ;;  %v1134_v20 = vmul.f32 %v1591_v9, %v1591_v9 }
 0x237   :  { %v1093_v11 = vadd.f32 %v1092_v7, %v855_v10  ;;  %v1132_v12 = vmul.f32 %v855_v10, %v855_v10  ;;  %v1592_v13 = vpop.f32.mrb[34].mxu1 }
 0x238   :  { %v1395_v14 = vpack.c.bf16 %v1592_v13, %v1591_v9  ;;  %v858_v15 = vpop.f32.mrb[35].mxu1  ;;  %v1135_v23 = vmul.f32 %v1592_v13, %v1592_v13 }
 0x239   :  { %v1163_v16 = vadd.f32 %v1162_v8, %v1132_v12  ;;  %v1390_v17 = vpack.c.bf16 %v858_v15, %v855_v10  ;;  %v1094_v18 = vadd.f32 %v1093_v11, %v858_v15  ;;  %v1133_v19 = vmul.f32 %v858_v15, %v858_v15 }
 0x23a   :  { %1435 = vst [vmem:[#allocation6 + $0x48] sm:$0xff] %v1395_v14  }
 0x23b   :  { %1434 = vst [vmem:[#allocation6 + $0x40] sm:$0xff] %v1390_v17   ;;  %v1095_v21 = vadd.f32 %v1591_v9, %v1094_v18  ;;  %v1164_v22 = vadd.f32 %v1163_v16, %v1133_v19 }
 0x23d   :  { %v1165_v24 = vadd.f32 %v1164_v22, %v1134_v20  ;;  %v1096_v25 = vadd.f32 %v1592_v13, %v1095_v21 }
 0x23f   :  { %v1166_v26 = vadd.f32 %v1165_v24, %v1135_v23 }
 0x245   :  { %v1595_v27 = vpop.f32.mrb[36].mxu1 }
 0x246   :  { %v871_v28 = vpop.f32.mrb[37].mxu1  ;;  %v1138_v38 = vmul.f32 %v1595_v27, %v1595_v27 }
 0x247   :  { %v1097_v29 = vadd.f32 %v1096_v25, %v871_v28  ;;  %v1136_v30 = vmul.f32 %v871_v28, %v871_v28  ;;  %v1596_v31 = vpop.f32.mrb[38].mxu1 }
 0x248   :  { %v1405_v32 = vpack.c.bf16 %v1596_v31, %v1595_v27  ;;  %v874_v33 = vpop.f32.mrb[39].mxu1  ;;  %v1139_v41 = vmul.f32 %v1596_v31, %v1596_v31 }
 0x249   :  { %v1167_v34 = vadd.f32 %v1166_v26, %v1136_v30  ;;  %v1400_v35 = vpack.c.bf16 %v874_v33, %v871_v28  ;;  %v1098_v36 = vadd.f32 %v1097_v29, %v874_v33  ;;  %v1137_v37 = vmul.f32 %v874_v33, %v874_v33 }
 0x24a   :  { %1437 = vst [vmem:[#allocation6 + $0x58] sm:$0xff] %v1405_v32  }
 0x24b   :  { %1436 = vst [vmem:[#allocation6 + $0x50] sm:$0xff] %v1400_v35   ;;  %v1099_v39 = vadd.f32 %v1595_v27, %v1098_v36  ;;  %v1168_v40 = vadd.f32 %v1167_v34, %v1137_v37 }
 0x24d   :  { %v1169_v42 = vadd.f32 %v1168_v40, %v1138_v38  ;;  %v1599_v43 = vpop.f32.mrb[40].mxu1  ;;  %v1100_v44 = vadd.f32 %v1596_v31, %v1099_v39 }
 0x24e   :  { %v887_v45 = vpop.f32.mrb[41].mxu1  ;;  %v1142_v56 = vmul.f32 %v1599_v43, %v1599_v43 }
 0x24f   :  { %v1101_v46 = vadd.f32 %v1100_v44, %v887_v45  ;;  %v1140_v47 = vmul.f32 %v887_v45, %v887_v45  ;;  %v1170_v48 = vadd.f32 %v1169_v42, %v1139_v41  ;;  %v1600_v49 = vpop.f32.mrb[42].mxu1 }
 0x250   :  { %v1415_v50 = vpack.c.bf16 %v1600_v49, %v1599_v43  ;;  %v890_v51 = vpop.f32.mrb[43].mxu1  ;;  %v1143_v59 = vmul.f32 %v1600_v49, %v1600_v49 }
 0x251   :  { %v1171_v52 = vadd.f32 %v1170_v48, %v1140_v47  ;;  %v1410_v53 = vpack.c.bf16 %v890_v51, %v887_v45  ;;  %v1102_v54 = vadd.f32 %v1101_v46, %v890_v51  ;;  %v1141_v55 = vmul.f32 %v890_v51, %v890_v51 }
 0x252   :  { %1439 = vst [vmem:[#allocation6 + $0x68] sm:$0xff] %v1415_v50  }
 0x253   :  { %1438 = vst [vmem:[#allocation6 + $0x60] sm:$0xff] %v1410_v53   ;;  %v1103_v57 = vadd.f32 %v1599_v43, %v1102_v54  ;;  %v1172_v58 = vadd.f32 %v1171_v52, %v1141_v55 }
 0x255   :  { %v1173_v60 = vadd.f32 %v1172_v58, %v1142_v56  ;;  %v1603_v61 = vpop.f32.mrb[44].mxu1  ;;  %v1104_v62 = vadd.f32 %v1600_v49, %v1103_v57 }
 0x256   :  { %v903_v63 = vpop.f32.mrb[45].mxu1  ;;  %v1146_v10 = vmul.f32 %v1603_v61, %v1603_v61 }
 0x257   :  { %v1105_v0 = vadd.f32 %v1104_v62, %v903_v63  ;;  %v1144_v1 = vmul.f32 %v903_v63, %v903_v63  ;;  %v1174_v2 = vadd.f32 %v1173_v60, %v1143_v59  ;;  %v1604_v3 = vpop.f32.mrb[46].mxu1 }
 0x258   :  { %v1425_v4 = vpack.c.bf16 %v1604_v3, %v1603_v61  ;;  %v906_v5 = vpop.f32.mrb[47].mxu1 }
 0x259   :  { %v1175_v6 = vadd.f32 %v1174_v2, %v1144_v1  ;;  %v1420_v7 = vpack.c.bf16 %v906_v5, %v903_v63  ;;  %v1106_v8 = vadd.f32 %v1105_v0, %v906_v5  ;;  %v1145_v9 = vmul.f32 %v906_v5, %v906_v5 }
 0x25a   :  { %1441 = vst [vmem:[#allocation6 + $0x78] sm:$0xff] %v1425_v4  }
 0x25b   :  { %1440 = vst [vmem:[#allocation6 + $0x70] sm:$0xff] %v1420_v7   ;;  %v1107_v11 = vadd.f32 %v1603_v61, %v1106_v8  ;;  %v1176_v12 = vadd.f32 %v1175_v6, %v1145_v9 }
 0x25c   :  { %1727 = shalt.err (!%p1724_p12)
}
 0x25d   :  { %s1728_s12 = scalar_lea.hbm %s1969_s3, 2048 }
 0x25e   :  { %p1729_p13 = scmp.ne.s32.totalorder %s1969_s3, %s1728_s12  ;;  %p1732_p0 = scmp.lt.u32.totalorder %s1728_s12, %s1969_s3 }
 0x260   :  { %p1734_p1 = pnand %p1732_p0, %p1729_p13 }
 0x262   :  { %1737 = shalt.err (!%p1734_p1)
}
 0x263   :  { %s1771_s17 = smov 64   ;;  %s1772_s18 = smov 4   ;;  %v1147_v13 = vmul.f32 %v1604_v3, %v1604_v3  ;;  %v1108_v14 = vadd.f32 %v1604_v3, %v1107_v11  ;;  %v1177_v15 = vadd.f32 %v1176_v12, %v1146_v10 }
 0x264   :  { %1197 = dma.vmem_to_hbm [thread:$0]  %s1192_s9, 2048, %s1969_s3, [#allocation5], %s1771_s17, %s1771_s17, %s1772_s18  }
 0x265   :  { %v1109_v16 = vrot.slane %v1108_v14, 4  ;;  %v1178_v17 = vadd.f32 %v1177_v15, %v1147_v13  ;;  %s1773_s21 = smov [#allocation7]  }
 0x266   :  { %s1204_s22 = sshll.u32 %s1773_s21, 4  ;;  %s1205_s22 = int_to_ptr.vmem [resolvable:$true] %s1204_s22 }
 0x267   :  { %v1110_v18 = vadd.f32 %v1109_v16, %v1108_v14  ;;  %v1179_v19 = vrot.slane %v1178_v17, 4  ;;  %s1738_s3 = scalar_lea.vmem %s1205_s22, 128  ;;  %p1743_p3 = scmp.lt.s32.totalorder %s1205_s22, %s1205_s22 }
 0x268   :  { %p1739_p2 = scmp.ne.s32.totalorder %s1205_s22, %s1738_s3  ;;  %p1744_p4 = scmp.lt.s32.totalorder %s1738_s3, %s1738_s3 }
 0x269   :  { %v1111_v20 = vrot.slane %v1110_v18, 2  ;;  %v1180_v21 = vadd.f32 %v1179_v19, %v1178_v17 }
 0x26a   :  { %p1745_p5 = por %p1744_p4, %p1743_p3 }
 0x26b   :  { %v1112_v22 = vadd.f32 %v1111_v20, %v1110_v18  ;;  %v1181_v23 = vrot.slane %v1180_v21, 2 }
 0x26c   :  { %p1746_p6 = pnand %p1745_p5, %p1739_p2 }
 0x26d   :  { %v1113_v24 = vrot.slane %v1112_v22, 1  ;;  %v1182_v25 = vadd.f32 %v1181_v23, %v1180_v21 }
 0x26f   :  { %v1114_v26 = vadd.f32 %v1113_v24, %v1112_v22  ;;  %v1183_v27 = vrot.slane %v1182_v25, 1 }
 0x271   :  { %1115 = vst [vmem:[#allocation7] sm:$0x1] %v1114_v26  ;;  %v1184_v28 = vadd.f32 %v1183_v27, %v1182_v25 }
 0x273   :  { %1185 = vst [vmem:[#allocation7 + $0x1] sm:$0x1] %v1184_v28 }
 0x274   :  { %1749 = shalt.err (!%p1746_p6)
}
 0x275   :  { %s1750_s25 = scalar_lea.hbm %s1970_s4, 128 }
 0x276   :  { %p1751_p7 = scmp.ne.s32.totalorder %s1970_s4, %s1750_s25  ;;  %p1754_p8 = scmp.lt.u32.totalorder %s1750_s25, %s1970_s4 }
 0x278   :  { %p1756_p9 = pnand %p1754_p8, %p1751_p7 }
 0x27a   :  { %1759 = shalt.err (!%p1756_p9)
}
 0x27b   :  { %1207 = dma.vmem_to_hbm [thread:$0]  %s1205_s22, 128, %s1970_s4, [#allocation8]  }
 0x27c   :  { %1762 = dma.done.wait [#allocation5], 2048  }
 0x27d   :  { %1763 = vsyncadd [#allocation5], 4294965248 }
 0x27e   :  { %1764 = dma.done.wait [#allocation8], 128  }
 0x27f   :  { %1765 = vsyncadd [#allocation8], 4294967168 }
 0x280   :  { %1214 = vsyncpa [#allocation4], 1 }
 0x281   :  { %1215 = vsyncpa [#allocation5], 1 }
 0x282   :  { %1216 = vsyncpa [#allocation8], 1 }

</bundles_post_ra>
